<compile_context>
chip_gen: v5e
topology: v5e:2x2
jax: 0.10.0
libtpu: 0.0.40
codegen_flags: <defaults>
</compile_context>

<pallas_src>
import jax
import jax.numpy as jnp
from jax.experimental import pallas as pl
from jax.experimental.pallas import tpu as pltpu

# sqrt(2/pi)*(x + 0.044715*x^3) == x*(_C1 + _C2*x^2)  (coefficients folded)
_C1 = 0.7978845608028654            # sqrt(2/pi)
_C2 = _C1 * 0.044715                # sqrt(2/pi) * 0.044715


def gelu_kernel(x_ref, o_ref):
    x = x_ref[...].astype(jnp.float32)        # f32 compute (safe for f32/bf16 in)
    inner = x * (_C1 + _C2 * (x * x))         # 3 mul + 1 add on VPU
    h = 0.5 * x                               # computed once
    # tanh lowers to the EUP (separate VLIW slot) -> ~free in this HBM-bound kernel
    o_ref[...] = (h + h * jnp.tanh(inner)).astype(o_ref.dtype)


def _generation_params():
    """Per-generation (target_block_bytes, vmem_limit_bytes)."""
    tile_bytes, vmem_limit = 8 << 20, 64 << 20          # v6e-class default
    kind = ""
    try:
        kind = jax.devices()[0].device_kind.lower()
    except Exception:
        pass
    vmem_cap = None
    try:
        vmem_cap = int(pltpu.get_tpu_info().vmem_capacity_bytes)
    except Exception:
        pass
    is_v7x = ((vmem_cap is not None and vmem_cap <= 80 * 1024 * 1024)
              or ("v7" in kind) or ("7x" in kind))
    if is_v7x:
        # 64 MiB physical VMEM but ~3.2 TB/s HBM -> biggest tiles, tight limit
        # (4 x 8 MiB double-buffered in/out + headroom stays under 64 MiB).
        tile_bytes, vmem_limit = 8 << 20, 48 << 20
    elif ("v5 lite" in kind) or ("v5e" in kind) or ("v5lite" in kind):
        # Slow HBM: per-step DMA already dominates the fixed overhead at 4 MiB,
        # but the 16 MiB scoped default must still be overridden.
        tile_bytes, vmem_limit = 4 << 20, 32 << 20
    return tile_bytes, vmem_limit


def _pick_2d_layout(x):
    """Flatten x into a lane-dense (rows, cols) layout.

    If x.size is a multiple of 128, cols is a 128-multiple so every store is
    an unmasked lane-dense vst. Otherwise keep the natural trailing dim and
    tile it in 128-multiples (only the ragged tail column block is masked).
    """
    n = x.size
    for cand in (2048, 1024, 512, 256, 128):
        if n % cand == 0:
            return x.reshape(n // cand, cand)
    if x.ndim >= 2:
        return x.reshape(-1, x.shape[-1])
    return x.reshape(1, n)


def gelu(x):
    orig_shape = x.shape
    if x.size == 0:
        return x

    target_block_bytes, vmem_limit_bytes = _generation_params()

    x2 = _pick_2d_layout(x)
    rows, cols = x2.shape
    itemsize = jnp.dtype(x.dtype).itemsize
    # Sublane packing granularity: 8 rows f32, 16 bf16, 32 int8/fp8.
    sublane = max(8, 32 // itemsize)

    # --- column tile: lane-dense (multiple of 128), capped to bound VMEM ---
    if cols <= 128:
        tile_cols = cols                        # block == full dim -> legal
    else:
        tile_cols = min(cols, 2048)
        tile_cols = (tile_cols // 128) * 128    # only ragged tail block masked

    # --- row tile: fill ~target_block_bytes per block, sublane aligned ---
    if rows <= sublane:
        tile_rows = rows                        # block == full dim -> legal
    else:
        tile_rows = target_block_bytes // max(1, tile_cols * itemsize)
        tile_rows = max(sublane, min(tile_rows, rows))
        tile_rows = (tile_rows // sublane) * sublane
        # Keep >= ~8 grid steps so both v7x TensorCores still pipeline.
        n_blocks = (-(-rows // tile_rows)) * (-(-cols // tile_cols))
        if n_blocks < 8 and rows >= 8 * sublane:
            alt = max(sublane, ((rows // 8) // sublane) * sublane)
            tile_rows = min(tile_rows, alt)

    grid = (-(-rows // tile_rows), -(-cols // tile_cols))

    out = pl.pallas_call(
        gelu_kernel,
        out_shape=jax.ShapeDtypeStruct((rows, cols), x.dtype),
        grid_spec=pltpu.PrefetchScalarGridSpec(
            num_scalar_prefetch=0,
            grid=grid,
            in_specs=[pl.BlockSpec((tile_rows, tile_cols), lambda i, j: (i, j))],
            out_specs=pl.BlockSpec((tile_rows, tile_cols), lambda i, j: (i, j)),
        ),
        compiler_params=pltpu.CompilerParams(
            dimension_semantics=("parallel", "parallel"),  # megacore-shardable
            vmem_limit_bytes=vmem_limit_bytes,
        ),
    )(x2)

    return out.reshape(orig_shape)


def _gelu_ref(x):
    xf = x.astype(jnp.float32)
    y = 0.5 * xf * (1.0 + jnp.tanh(jnp.sqrt(2.0 / jnp.pi)
                                   * (xf + 0.044715 * xf ** 3)))
    return y.astype(x.dtype)


if __name__ == "__main__":
    key = jax.random.PRNGKey(0)

    # Main case: GPT-2-style MLP activation tensor (small).
    batch, seq, hidden = 2, 8, 32
    x = jax.random.normal(key, (batch, seq, hidden), dtype=jnp.float32)
    out = gelu(x)
    jax.block_until_ready(out)
    assert out.shape == x.shape
    assert jnp.allclose(out, _gelu_ref(x), atol=1e-5, rtol=1e-5)

    # Ragged case (size not a multiple of 128) exercises the fallback layout.
    x_odd = jax.random.normal(jax.random.PRNGKey(1), (3, 5, 7), dtype=jnp.float32)
    out_odd = gelu(x_odd)
    jax.block_until_ready(out_odd)
    assert out_odd.shape == x_odd.shape
    assert jnp.allclose(out_odd, _gelu_ref(x_odd), atol=1e-5, rtol=1e-5)

    print("KERNEL_OK")
</pallas_src>

<mosaic_0001>
module attributes {stable_mosaic.version = 11 : i64} {
  func.func @gelu_kernel(%arg0: i32, %arg1: i32, %arg2: memref<1x512xf32, #tpu.memory_space<vmem>>, %arg3: memref<1x512xf32, #tpu.memory_space<vmem>>) attributes {dimension_semantics = [#tpu.dimension_semantics<parallel>, #tpu.dimension_semantics<parallel>], iteration_bounds = array<i64: 1, 1>, scalar_prefetch = 0 : i64, scratch_operands = 0 : i64, tpu.core_type = #tpu.core_type<tc>, window_params = [{transform_indices = @transform_0, window_bounds = array<i64: 1, 512>}, {transform_indices = @transform_1, window_bounds = array<i64: 1, 512>}]} {
    %c0 = arith.constant 0 : index
    %c0_0 = arith.constant 0 : index
    %0 = vector.load %arg2[%c0, %c0_0] : memref<1x512xf32, #tpu.memory_space<vmem>>, vector<1x512xf32>
    %1 = arith.mulf %0, %0 : vector<1x512xf32>
    %cst = arith.constant 0.0356774069 : f32
    %2 = vector.broadcast %cst : f32 to vector<1x512xf32>
    %3 = arith.mulf %2, %1 : vector<1x512xf32>
    %cst_1 = arith.constant 0.797884583 : f32
    %4 = vector.broadcast %cst_1 : f32 to vector<1x512xf32>
    %5 = arith.addf %4, %3 : vector<1x512xf32>
    %6 = arith.mulf %0, %5 : vector<1x512xf32>
    %cst_2 = arith.constant 5.000000e-01 : f32
    %7 = vector.broadcast %cst_2 : f32 to vector<1x512xf32>
    %8 = arith.mulf %7, %0 : vector<1x512xf32>
    %9 = math.tanh %6 : vector<1x512xf32>
    %10 = arith.mulf %8, %9 : vector<1x512xf32>
    %11 = arith.addf %8, %10 : vector<1x512xf32>
    %c0_3 = arith.constant 0 : index
    %c0_4 = arith.constant 0 : index
    %12 = vector.load %arg3[%c0_3, %c0_4] : memref<1x512xf32, #tpu.memory_space<vmem>>, vector<1x512xf32>
    tpu.vector_store %arg3[%c0_3, %c0_4], %11 {strides = array<i32>} : memref<1x512xf32, #tpu.memory_space<vmem>>, vector<1x512xf32>,
    return
  }
  func.func @transform_0(%arg0: i32, %arg1: i32) -> (i32, i32) {
    %c0_i32 = arith.constant 0 : i32
    return %arg0, %arg1 : i32, i32
  }
  func.func @transform_1(%arg0: i32, %arg1: i32) -> (i32, i32) {
    %c0_i32 = arith.constant 0 : i32
    return %arg0, %arg1 : i32, i32
  }
}

</mosaic_0001>

<bundles_post_ra>
// kernel: tpu_custom_call.1
= control target key start
LH: loop header
LB: loop body
LE: loop exit
PB: predicated region body
PF: predicated region fallthrough
CT: control target
= control target key end

     0   :  { %6 = vsyncpa [#allocation3], 0  ;;  %s128_s0 = inlined_call_operand.hbm [shape: f32[1,512], index: 0, kind: input, shape index: {}]   ;;  %s129_s1 = inlined_call_operand.hbm [shape: f32[1,512], index: 1, kind: output, shape index: {}]  }
   0x1   :  { %7 = vsyncpa [#allocation4], 0  ;;  %s13_s8 = sshll.u32 %s128_s0, 4  ;;  %s110_s9 = smov [#allocation2]   ;;  %s14_s8 = int_to_ptr.hbm [resolvable:$true] %s13_s8 }
   0x2   :  { %s15_s10 = sshll.u32 %s110_s9, 4  ;;  %s16_s10 = int_to_ptr.vmem [resolvable:$true] %s15_s10 }
   0x3   :  { %18 = dma.hbm_to_vmem [thread:$0]  %s14_s8, 64, %s16_s10, [#allocation3]  }
   0x4   :  { %106 = dma.done.wait [#allocation3], 64  }
   0x5   :  { %107 = vsyncadd [#allocation3], 4294967232  ;;  %v23_v0 = vld [vmem:[#allocation2] sm:$0xf]  ;;  %v32_v6 = vlaneseq  ;;  %s111_s11 = smov [#allocation5]   ;;  %s44_s14 = sshll.u32 %s129_s1, 4  ;;  %s45_s14 = int_to_ptr.hbm [resolvable:$true] %s44_s14 }
   0x6   :  { %v24_v1 = vmul.f32 %v23_v0, %v23_v0  ;;  %v28_v5 = vmul.f32 0.5, %v23_v0  ;;  %s42_s12 = sshll.u32 %s111_s11, 4  ;;  %s43_s12 = int_to_ptr.vmem [resolvable:$true] %s42_s12 }
   0x7   :  { %vm34_vm0 = vcmp.lt.s32.totalorder %v32_v6, 512 }
   0x8   :  { %v25_v2 = vmul.f32 0.035677407, %v24_v1 }
   0xa   :  { %v26_v3 = vadd.f32 0.7978846, %v25_v2 }
   0xc   :  { %v27_v4 = vmul.f32 %v26_v3, %v23_v0 }
   0xe   :  { %56 = vtanh.f32 %v27_v4 }
  0x14   :  { %v57_v7 = vpop.eup %56 }
  0x15   :  { %v30_v8 = vmul.f32 %v57_v7, %v28_v5 }
  0x17   :  { %v31_v9 = vadd.f32 %v30_v8, %v28_v5 }
  0x19   :  { %36 = vst.msk [vmem:[#allocation5] sm:$0xf] %vm34_vm0, %v31_v9 }
  0x1a   :  { %47 = dma.vmem_to_hbm [thread:$0]  %s43_s12, 64, %s45_s14, [#allocation4]  }
  0x1b   :  { %108 = dma.done.wait [#allocation4], 64  }
  0x1c   :  { %109 = vsyncadd [#allocation4], 4294967232 }
  0x1d   :  { %52 = vsyncpa [#allocation3], 1 }
  0x1e   :  { %53 = vsyncpa [#allocation4], 1 }

</bundles_post_ra>
